<compile_context>
chip_gen: v7x
topology: tpu7x:2x2x1
jax: 0.10.0
libtpu: 0.0.40
codegen_flags: <defaults>
</compile_context>

<pallas_src>
import jax
import jax.numpy as jnp
import numpy as np
from jax.experimental import pallas as pl
from jax.experimental.pallas import tpu as pltpu


def _round_up(x, m):
    return ((x + m - 1) // m) * m


# ----------------------------------------------------------------------------
# Fused whole-network kernel
# ----------------------------------------------------------------------------
def _make_tcn_kernel(blocks_cfg, *, k, Cp, LP, bblk, num_out,
                     fc_w_off, fc_b_off, compute_dtype):
    nblk = len(blocks_cfg)

    def kernel(x_ref, mask_ref, w_ref, aux_ref, o_ref):
        # Materialized valid-lane mask (1.0 on real timesteps, 0.0 on the causal
        # pad zone of every batch segment). Loaded once and reused -> no
        # re-emitted broadcast_in_dim in the unrolled block chain.
        maskf = mask_ref[...]                                   # (Cp, N) f32

        def stacked_taps(inp_c, dil):
            # im2col: k causally shifted (dilated) taps stacked along the
            # contraction axis -> ONE MXU matmul of depth k*Cp per conv.
            # The roll wraps only into the masked pad zone of the next batch
            # segment (pad0 >= (k-1)*dil), so valid lanes never see it.
            ts = []
            for j in range(k):
                s = (k - 1 - j) * dil
                ts.append(inp_c if s == 0 else pltpu.roll(inp_c, s, axis=1))
            return ts[0] if k == 1 else jnp.concatenate(ts, axis=0)

        # MXU tap inputs stay in compute_dtype (cast BEFORE roll/concat);
        # bias / ReLU / residual math stays f32 on the VPU.
        cur_c = x_ref[...]                                      # (Cp, N) cd, pad lanes zero
        cur_f = cur_c.astype(jnp.float32)                       # residual / FC path

        for bi, bc in enumerate(blocks_cfg):
            dil = bc["dilation"]
            w1 = w_ref[bc["w1_off"]:bc["w1_off"] + Cp, :]       # (Cp, k*Cp) cd
            w2 = w_ref[bc["w2_off"]:bc["w2_off"] + Cp, :]
            b1 = aux_ref[bc["b1_off"]:bc["b1_off"] + Cp, 0:1]   # (Cp, 1) f32
            b2 = aux_ref[bc["b2_off"]:bc["b2_off"] + Cp, 0:1]

            # conv1 -> chomp -> ReLU   (dropout == identity in eval mode)
            h1 = jnp.maximum(
                jnp.dot(w1, stacked_taps(cur_c, dil),
                        preferred_element_type=jnp.float32) + b1, 0.0)
            h1_c = (h1 * maskf).astype(compute_dtype)           # re-zero pad lanes
            # conv2 -> chomp -> ReLU
            h2 = jnp.maximum(
                jnp.dot(w2, stacked_taps(h1_c, dil),
                        preferred_element_type=jnp.float32) + b2, 0.0)
            # residual: identity or 1x1 conv (kept in f32 for accuracy)
            if bc["has_down"]:
                wd = aux_ref[bc["wd_off"]:bc["wd_off"] + Cp, 0:Cp]
                bd = aux_ref[bc["bd_off"]:bc["bd_off"] + Cp, 0:1]
                res = jnp.dot(wd, cur_f, preferred_element_type=jnp.float32) + bd
            else:
                res = cur_f
            out = jnp.maximum(h2 + res, 0.0)                    # (Cp, N) f32
            cur_f = out
            if bi + 1 < nblk:            # only the MXU tap input needs zero pads
                cur_c = (out * maskf).astype(compute_dtype)

        # Fused FC epilogue: x[:, :, -1] -> Linear.  Last valid timestep of
        # batch b is lane (b+1)*LP - 1.  Pure f32 multiply + sublane reduce.
        # TODO(synk): for num_outputs >~ 8 switch to an MXU dot of
        #             (O, Cp) x (Cp, bblk) over the gathered last-step columns.
        fc_w = aux_ref[fc_w_off:fc_w_off + Cp, 0:num_out]        # (Cp, O)
        fc_b = aux_ref[fc_b_off:fc_b_off + 1, 0:num_out]         # (1, O)
        ys = []
        for b in range(bblk):
            col = cur_f[:, (b + 1) * LP - 1:(b + 1) * LP]        # (Cp, 1)
            ys.append(jnp.sum(fc_w * col, axis=0, keepdims=True) + fc_b)
        y = ys[0] if bblk == 1 else jnp.concatenate(ys, axis=0)
        o_ref[0] = y.astype(o_ref.dtype)                         # (bblk, O)

    return kernel


# ----------------------------------------------------------------------------
# Wrapper: glue (weight-norm already folded, slab packing, causal layout)
# ----------------------------------------------------------------------------
def tcn_forward(x, params, *, compute_dtype=jnp.bfloat16):
    """x: (B, C_in, L) float32 -> (B, num_outputs) float32."""
    x = jnp.asarray(x, jnp.float32)
    B, c_in0, L = x.shape
    blocks = params["blocks"]
    nblk = len(blocks)
    k = int(blocks[0]["w1"].shape[2])
    assert all(int(b["w1"].shape[2]) == k for b in blocks)
    max_pad = (k - 1) * max(int(b["dilation"]) for b in blocks)

    # Lane-dense causal layout: each batch owns one LP-lane segment whose zero
    # pad zone on the left supplies the causal history for every block.
    LP = _round_up(L + max_pad, 128)
    pad0 = LP - L
    assert pad0 >= max_pad, "pad zone must cover (k-1)*dilation for every block"

    # Uniform channel width padded to the sublane multiple (16 bf16 / 8 f32) so
    # tap concatenation and weight-slab row offsets are tile aligned.
    spad = 16 if np.dtype(compute_dtype).itemsize < 4 else 8
    max_c = max([c_in0] + [int(b["w1"].shape[0]) for b in blocks])
    Cp = _round_up(max_c, spad)
    O = int(params["fc_w"].shape[0])

    # ---- batch packing along lanes: fill the MXU N dimension ----------------
    lane_target = 512                      # aim for matmul N >= 256 (ideally 512)
    bblk = max(1, min(B, lane_target // LP)) if LP <= lane_target else 1
    nsteps = -(-B // bblk)
    # v7x has two TensorCores: prefer >=2 grid steps if each still has N >= 256.
    if nsteps == 1 and B > 1 and ((B + 1) // 2) * LP >= 256:
        bblk = (B + 1) // 2
        nsteps = -(-B // bblk)
    Bpad = nsteps * bblk
    N = bblk * LP                          # lanes per grid step

    # One-time causal slab (Cp, Bpad*LP), cast to compute_dtype (bf16 halves DMA).
    xp = jnp.pad(x, ((0, Bpad - B), (0, Cp - c_in0), (pad0, 0)))  # (Bpad, Cp, LP)
    x_slab = (jnp.transpose(xp, (1, 0, 2)).reshape(Cp, Bpad * LP)
              .astype(compute_dtype))

    # Materialized per-step valid-lane mask (grid invariant).
    seg = jnp.concatenate([jnp.zeros((pad0,), jnp.float32),
                           jnp.ones((L,), jnp.float32)])
    mask = jnp.broadcast_to(jnp.tile(seg, bblk)[None, :], (Cp, N))

    # ---- fuse all parameters into two slabs: one compute_dtype conv-weight
    #      slab + one f32 aux slab (biases, 1x1 downsample, FC) ---------------
    Wf = max(Cp, O)
    w_rows, aux_rows = [], []
    aux_off = 0

    def aux_add(mat):
        nonlocal aux_off
        off = aux_off
        r, c = mat.shape
        aux_rows.append(jnp.pad(mat.astype(jnp.float32), ((0, 0), (0, Wf - c))))
        aux_off += r
        return off

    def pack_conv_w(w):
        co, ci, _ = w.shape
        wt = jnp.transpose(w, (0, 2, 1))                         # (co, k, ci)
        wp = jnp.zeros((Cp, k, Cp), jnp.float32).at[:co, :, :ci].set(wt)
        return wp.reshape(Cp, k * Cp)                            # col j*Cp+i == w[o,i,j]

    blocks_cfg = []
    for blk in blocks:
        c_out, c_in, _ = blk["w1"].shape
        cfg = dict(dilation=int(blk["dilation"]), w1_off=len(w_rows) * Cp)
        w_rows.append(pack_conv_w(blk["w1"]))
        cfg["w2_off"] = len(w_rows) * Cp
        w_rows.append(pack_conv_w(blk["w2"]))
        cfg["b1_off"] = aux_add(jnp.pad(blk["b1"].reshape(-1, 1),
                                        ((0, Cp - c_out), (0, 0))))
        cfg["b2_off"] = aux_add(jnp.pad(blk["b2"].reshape(-1, 1),
                                        ((0, Cp - c_out), (0, 0))))
        cfg["has_down"] = blk["wd"] is not None
        if cfg["has_down"]:
            wd = jnp.zeros((Cp, Cp), jnp.float32).at[:c_out, :c_in].set(
                blk["wd"][:, :, 0])
            cfg["wd_off"] = aux_add(wd)
            cfg["bd_off"] = aux_add(jnp.pad(blk["bd"].reshape(-1, 1),
                                            ((0, Cp - c_out), (0, 0))))
        blocks_cfg.append(cfg)

    c_last = int(blocks[-1]["w1"].shape[0])
    fc_w_off = aux_add(jnp.zeros((Cp, O), jnp.float32)
                       .at[:c_last, :].set(params["fc_w"].T))
    fc_b_off = aux_add(params["fc_b"].reshape(1, O))

    w_slab = jnp.concatenate(w_rows, axis=0).astype(compute_dtype)  # (2*nblk*Cp, k*Cp)
    aux_slab = jnp.concatenate(aux_rows, axis=0)                    # (R, Wf) f32

    kernel = _make_tcn_kernel(blocks_cfg, k=k, Cp=Cp, LP=LP, bblk=bblk,
                              num_out=O, fc_w_off=fc_w_off, fc_b_off=fc_b_off,
                              compute_dtype=compute_dtype)

    out = pl.pallas_call(
        kernel,
        out_shape=jax.ShapeDtypeStruct((nsteps, bblk, O), jnp.float32),
        grid=(nsteps,),
        in_specs=[
            pl.BlockSpec((Cp, N), lambda i: (0, i)),       # batch-lane tile per step
            pl.BlockSpec(mask.shape, lambda i: (0, 0)),    # grid-invariant, resident
            pl.BlockSpec(w_slab.shape, lambda i: (0, 0)),
            pl.BlockSpec(aux_slab.shape, lambda i: (0, 0)),
        ],
        out_specs=pl.BlockSpec((1, bblk, O), lambda i: (i, 0, 0)),
        compiler_params=pltpu.CompilerParams(
            dimension_semantics=("parallel",),             # batch tiles across TCs
            vmem_limit_bytes=32 * 1024 * 1024),
        # TODO(synk): pipeline_mode=pl.Buffered(1) on the grid-invariant slabs
        #             would reclaim their unused second buffer on v7x; omitted
        #             here because the slabs are only a few KB at these shapes.
    )(x_slab, mask, w_slab, aux_slab)

    return out.reshape(Bpad, O)[:B]


# ----------------------------------------------------------------------------
# Deterministic parameter init (weight_norm reparam folded in glue)
# ----------------------------------------------------------------------------
def _weight_norm_weight(key, shape):
    kv, kg = jax.random.split(key)
    v = 0.01 * jax.random.normal(kv, shape, jnp.float32)
    g = 0.5 + jax.random.uniform(kg, (shape[0],), jnp.float32)
    # NOTE: +1e-12 deviates (negligibly) from PyTorch's raw-norm division.
    norm = jnp.sqrt(jnp.sum(v * v, axis=(1, 2), keepdims=True)) + 1e-12
    return g[:, None, None] * v / norm


def init_params(key, num_inputs, num_channels, num_outputs, ksize):
    blocks = []
    c_in = num_inputs
    for i, c_out in enumerate(num_channels):
        key, k1, k2, k3, k4, k5, k6 = jax.random.split(key, 7)
        w1 = _weight_norm_weight(k1, (c_out, c_in, ksize))
        b1 = 0.01 * jax.random.normal(k2, (c_out,), jnp.float32)
        w2 = _weight_norm_weight(k3, (c_out, c_out, ksize))
        b2 = 0.01 * jax.random.normal(k4, (c_out,), jnp.float32)
        if c_in != c_out:
            wd = 0.01 * jax.random.normal(k5, (c_out, c_in, 1), jnp.float32)
            bd = 0.01 * jax.random.normal(k6, (c_out,), jnp.float32)
        else:
            wd, bd = None, None
        blocks.append(dict(w1=w1, b1=b1, w2=w2, b2=b2, wd=wd, bd=bd,
                           dilation=2 ** i))
        c_in = c_out
    key, kw, kb = jax.random.split(key, 3)
    fc_w = 0.1 * jax.random.normal(kw, (num_outputs, num_channels[-1]), jnp.float32)
    fc_b = 0.01 * jax.random.normal(kb, (num_outputs,), jnp.float32)
    return dict(blocks=blocks, fc_w=fc_w, fc_b=fc_b)


# ----------------------------------------------------------------------------
# Pure-JAX reference (correctness check)
# ----------------------------------------------------------------------------
def _ref_causal_conv(x, w, b, d):
    B, C_in, L = x.shape
    C_out, _, k = w.shape
    p = (k - 1) * d
    xp = jnp.pad(x, ((0, 0), (0, 0), (p, 0)))
    y = jnp.zeros((B, C_out, L), x.dtype) + b[None, :, None]
    for j in range(k):
        y = y + jnp.einsum("oi,bil->bol", w[:, :, j], xp[:, :, j * d:j * d + L])
    return y


def ref_forward(x, params):
    for blk in params["blocks"]:
        d = blk["dilation"]
        h1 = jax.nn.relu(_ref_causal_conv(x, blk["w1"], blk["b1"], d))
        h2 = jax.nn.relu(_ref_causal_conv(h1, blk["w2"], blk["b2"], d))
        res = x if blk["wd"] is None else _ref_causal_conv(x, blk["wd"], blk["bd"], 1)
        x = jax.nn.relu(h2 + res)
    last = x[:, :, -1]                                            # (B, C_last)
    y = jnp.sum(last[:, :, None] * params["fc_w"].T[None, :, :], axis=1)
    return y + params["fc_b"][None, :]


# ----------------------------------------------------------------------------
if __name__ == "__main__":
    key = jax.random.PRNGKey(0)
    B, L = 2, 16
    # 3 levels (dilations 1,2,4); last block has C_in == C_out so both the
    # identity-residual and 1x1-downsample paths are exercised.
    num_inputs, num_channels, num_outputs, ksize = 4, [8, 16, 16], 1, 2

    key, kp, kx = jax.random.split(key, 3)
    params = init_params(kp, num_inputs, num_channels, num_outputs, ksize)
    x = jax.random.normal(kx, (B, num_inputs, L), jnp.float32)

    y_ref = ref_forward(x, params)

    # f32 MXU-operand path: tight check (accumulation-order differences only).
    y32 = jax.block_until_ready(tcn_forward(x, params, compute_dtype=jnp.float32))
    np.testing.assert_allclose(np.asarray(y32), np.asarray(y_ref),
                               rtol=1e-3, atol=1e-4)

    # bf16 MXU-operand path (f32 accumulation, f32 residual/epilogue).
    ybf = jax.block_until_ready(tcn_forward(x, params, compute_dtype=jnp.bfloat16))
    np.testing.assert_allclose(np.asarray(ybf), np.asarray(y_ref),
                               rtol=1e-1, atol=5e-2)

    assert y32.shape == (B, num_outputs) and ybf.shape == (B, num_outputs)
    print("KERNEL_OK")
</pallas_src>

<mosaic_0001>
module attributes {stable_mosaic.version = 11 : i64} {
  func.func @kernel(%arg0: i32, %arg1: memref<16x256xf32, #tpu.memory_space<vmem>>, %arg2: memref<16x256xf32, #tpu.memory_space<vmem>>, %arg3: memref<96x32xf32, #tpu.memory_space<vmem>>, %arg4: memref<177x16xf32, #tpu.memory_space<vmem>>, %arg5: memref<1x2x1xf32, #tpu.memory_space<vmem>>) attributes {dimension_semantics = [#tpu.dimension_semantics<parallel>], iteration_bounds = array<i64: 1>, scalar_prefetch = 0 : i64, scratch_operands = 0 : i64, tpu.core_type = #tpu.core_type<tc>, window_params = [{transform_indices = @transform_0, window_bounds = array<i64: 16, 256>}, {pipeline_mode = #tpu.pipeline_mode<synchronous>, transform_indices = @transform_1, window_bounds = array<i64: 16, 256>}, {pipeline_mode = #tpu.pipeline_mode<synchronous>, transform_indices = @transform_2, window_bounds = array<i64: 96, 32>}, {pipeline_mode = #tpu.pipeline_mode<synchronous>, transform_indices = @transform_3, window_bounds = array<i64: 177, 16>}, {transform_indices = @transform_4, window_bounds = array<i64: 1, 2, 1>}]} {
    %c0 = arith.constant 0 : index
    %c0_0 = arith.constant 0 : index
    %0 = vector.load %arg2[%c0, %c0_0] : memref<16x256xf32, #tpu.memory_space<vmem>>, vector<16x256xf32>
    %c0_1 = arith.constant 0 : index
    %c0_2 = arith.constant 0 : index
    %1 = vector.load %arg1[%c0_1, %c0_2] : memref<16x256xf32, #tpu.memory_space<vmem>>, vector<16x256xf32>
    %c0_3 = arith.constant 0 : index
    %c0_4 = arith.constant 0 : index
    %2 = vector.load %arg3[%c0_3, %c0_4] : memref<96x32xf32, #tpu.memory_space<vmem>>, vector<16x32xf32>
    %c16 = arith.constant 16 : index
    %c0_5 = arith.constant 0 : index
    %3 = vector.load %arg3[%c16, %c0_5] : memref<96x32xf32, #tpu.memory_space<vmem>>, vector<16x32xf32>
    %c0_6 = arith.constant 0 : index
    %c0_7 = arith.constant 0 : index
    %4 = vector.load %arg4[%c0_6, %c0_7] : memref<177x16xf32, #tpu.memory_space<vmem>>, vector<16x1xf32>
    %c16_8 = arith.constant 16 : index
    %c0_9 = arith.constant 0 : index
    %5 = vector.load %arg4[%c16_8, %c0_9] : memref<177x16xf32, #tpu.memory_space<vmem>>, vector<16x1xf32>
    %c1_i32 = arith.constant 1 : i32
    %6 = tpu.dynamic_rotate %1 by %c1_i32 dim 1 : vector<16x256xf32>, i32 -> vector<16x256xf32>
    %7 = tpu.concatenate %6, %1 in 0 : vector<16x256xf32>, vector<16x256xf32> -> vector<32x256xf32>
    %cst = arith.constant dense<0.000000e+00> : vector<16x256xf32>
    %8 = tpu.matmul %2, %7, %cst {dimension_numbers = #tpu.dot_dimension_numbers<[1], [0], [0], [1], [0, 0, 1, 1], [], []>} : vector<16x32xf32>, vector<32x256xf32>, vector<16x256xf32> -> vector<16x256xf32>
    %9 = vector.broadcast %4 : vector<16x1xf32> to vector<16x256xf32>
    %10 = arith.addf %8, %9 : vector<16x256xf32>
    %cst_10 = arith.constant 0.000000e+00 : f32
    %11 = vector.broadcast %cst_10 : f32 to vector<16x256xf32>
    %12 = arith.maximumf %10, %11 : vector<16x256xf32>
    %13 = arith.mulf %12, %0 : vector<16x256xf32>
    %c1_i32_11 = arith.constant 1 : i32
    %14 = tpu.dynamic_rotate %13 by %c1_i32_11 dim 1 : vector<16x256xf32>, i32 -> vector<16x256xf32>
    %15 = tpu.concatenate %14, %13 in 0 : vector<16x256xf32>, vector<16x256xf32> -> vector<32x256xf32>
    %cst_12 = arith.constant dense<0.000000e+00> : vector<16x256xf32>
    %16 = tpu.matmul %3, %15, %cst_12 {dimension_numbers = #tpu.dot_dimension_numbers<[1], [0], [0], [1], [0, 0, 1, 1], [], []>} : vector<16x32xf32>, vector<32x256xf32>, vector<16x256xf32> -> vector<16x256xf32>
    %17 = vector.broadcast %5 : vector<16x1xf32> to vector<16x256xf32>
    %18 = arith.addf %16, %17 : vector<16x256xf32>
    %cst_13 = arith.constant 0.000000e+00 : f32
    %19 = vector.broadcast %cst_13 : f32 to vector<16x256xf32>
    %20 = arith.maximumf %18, %19 : vector<16x256xf32>
    %c32 = arith.constant 32 : index
    %c0_14 = arith.constant 0 : index
    %21 = vector.load %arg4[%c32, %c0_14] : memref<177x16xf32, #tpu.memory_space<vmem>>, vector<16x16xf32>
    %c48 = arith.constant 48 : index
    %c0_15 = arith.constant 0 : index
    %22 = vector.load %arg4[%c48, %c0_15] : memref<177x16xf32, #tpu.memory_space<vmem>>, vector<16x1xf32>
    %cst_16 = arith.constant dense<0.000000e+00> : vector<16x256xf32>
    %23 = tpu.matmul %21, %1, %cst_16 {dimension_numbers = #tpu.dot_dimension_numbers<[1], [0], [0], [1], [0, 0, 1, 1], [], []>} : vector<16x16xf32>, vector<16x256xf32>, vector<16x256xf32> -> vector<16x256xf32>
    %24 = vector.broadcast %22 : vector<16x1xf32> to vector<16x256xf32>
    %25 = arith.addf %23, %24 : vector<16x256xf32>
    %26 = arith.addf %20, %25 : vector<16x256xf32>
    %cst_17 = arith.constant 0.000000e+00 : f32
    %27 = vector.broadcast %cst_17 : f32 to vector<16x256xf32>
    %28 = arith.maximumf %26, %27 : vector<16x256xf32>
    %29 = arith.mulf %28, %0 : vector<16x256xf32>
    %c32_18 = arith.constant 32 : index
    %c0_19 = arith.constant 0 : index
    %30 = vector.load %arg3[%c32_18, %c0_19] : memref<96x32xf32, #tpu.memory_space<vmem>>, vector<16x32xf32>
    %c48_20 = arith.constant 48 : index
    %c0_21 = arith.constant 0 : index
    %31 = vector.load %arg3[%c48_20, %c0_21] : memref<96x32xf32, #tpu.memory_space<vmem>>, vector<16x32xf32>
    %c64 = arith.constant 64 : index
    %c0_22 = arith.constant 0 : index
    %32 = vector.load %arg4[%c64, %c0_22] : memref<177x16xf32, #tpu.memory_space<vmem>>, vector<16x1xf32>
    %c80 = arith.constant 80 : index
    %c0_23 = arith.constant 0 : index
    %33 = vector.load %arg4[%c80, %c0_23] : memref<177x16xf32, #tpu.memory_space<vmem>>, vector<16x1xf32>
    %c2_i32 = arith.constant 2 : i32
    %34 = tpu.dynamic_rotate %29 by %c2_i32 dim 1 : vector<16x256xf32>, i32 -> vector<16x256xf32>
    %35 = tpu.concatenate %34, %29 in 0 : vector<16x256xf32>, vector<16x256xf32> -> vector<32x256xf32>
    %cst_24 = arith.constant dense<0.000000e+00> : vector<16x256xf32>
    %36 = tpu.matmul %30, %35, %cst_24 {dimension_numbers = #tpu.dot_dimension_numbers<[1], [0], [0], [1], [0, 0, 1, 1], [], []>} : vector<16x32xf32>, vector<32x256xf32>, vector<16x256xf32> -> vector<16x256xf32>
    %37 = vector.broadcast %32 : vector<16x1xf32> to vector<16x256xf32>
    %38 = arith.addf %36, %37 : vector<16x256xf32>
    %cst_25 = arith.constant 0.000000e+00 : f32
    %39 = vector.broadcast %cst_25 : f32 to vector<16x256xf32>
    %40 = arith.maximumf %38, %39 : vector<16x256xf32>
    %41 = arith.mulf %40, %0 : vector<16x256xf32>
    %c2_i32_26 = arith.constant 2 : i32
    %42 = tpu.dynamic_rotate %41 by %c2_i32_26 dim 1 : vector<16x256xf32>, i32 -> vector<16x256xf32>
    %43 = tpu.concatenate %42, %41 in 0 : vector<16x256xf32>, vector<16x256xf32> -> vector<32x256xf32>
    %cst_27 = arith.constant dense<0.000000e+00> : vector<16x256xf32>
    %44 = tpu.matmul %31, %43, %cst_27 {dimension_numbers = #tpu.dot_dimension_numbers<[1], [0], [0], [1], [0, 0, 1, 1], [], []>} : vector<16x32xf32>, vector<32x256xf32>, vector<16x256xf32> -> vector<16x256xf32>
    %45 = vector.broadcast %33 : vector<16x1xf32> to vector<16x256xf32>
    %46 = arith.addf %44, %45 : vector<16x256xf32>
    %cst_28 = arith.constant 0.000000e+00 : f32
    %47 = vector.broadcast %cst_28 : f32 to vector<16x256xf32>
    %48 = arith.maximumf %46, %47 : vector<16x256xf32>
    %c96 = arith.constant 96 : index
    %c0_29 = arith.constant 0 : index
    %49 = vector.load %arg4[%c96, %c0_29] : memref<177x16xf32, #tpu.memory_space<vmem>>, vector<16x16xf32>
    %c112 = arith.constant 112 : index
    %c0_30 = arith.constant 0 : index
    %50 = vector.load %arg4[%c112, %c0_30] : memref<177x16xf32, #tpu.memory_space<vmem>>, vector<16x1xf32>
    %cst_31 = arith.constant dense<0.000000e+00> : vector<16x256xf32>
    %51 = tpu.matmul %49, %28, %cst_31 {dimension_numbers = #tpu.dot_dimension_numbers<[1], [0], [0], [1], [0, 0, 1, 1], [], []>} : vector<16x16xf32>, vector<16x256xf32>, vector<16x256xf32> -> vector<16x256xf32>
    %52 = vector.broadcast %50 : vector<16x1xf32> to vector<16x256xf32>
    %53 = arith.addf %51, %52 : vector<16x256xf32>
    %54 = arith.addf %48, %53 : vector<16x256xf32>
    %cst_32 = arith.constant 0.000000e+00 : f32
    %55 = vector.broadcast %cst_32 : f32 to vector<16x256xf32>
    %56 = arith.maximumf %54, %55 : vector<16x256xf32>
    %57 = arith.mulf %56, %0 : vector<16x256xf32>
    %c64_33 = arith.constant 64 : index
    %c0_34 = arith.constant 0 : index
    %58 = vector.load %arg3[%c64_33, %c0_34] : memref<96x32xf32, #tpu.memory_space<vmem>>, vector<16x32xf32>
    %c80_35 = arith.constant 80 : index
    %c0_36 = arith.constant 0 : index
    %59 = vector.load %arg3[%c80_35, %c0_36] : memref<96x32xf32, #tpu.memory_space<vmem>>, vector<16x32xf32>
    %c128 = arith.constant 128 : index
    %c0_37 = arith.constant 0 : index
    %60 = vector.load %arg4[%c128, %c0_37] : memref<177x16xf32, #tpu.memory_space<vmem>>, vector<16x1xf32>
    %c144 = arith.constant 144 : index
    %c0_38 = arith.constant 0 : index
    %61 = vector.load %arg4[%c144, %c0_38] : memref<177x16xf32, #tpu.memory_space<vmem>>, vector<16x1xf32>
    %c4_i32 = arith.constant 4 : i32
    %62 = tpu.dynamic_rotate %57 by %c4_i32 dim 1 : vector<16x256xf32>, i32 -> vector<16x256xf32>
    %63 = tpu.concatenate %62, %57 in 0 : vector<16x256xf32>, vector<16x256xf32> -> vector<32x256xf32>
    %cst_39 = arith.constant dense<0.000000e+00> : vector<16x256xf32>
    %64 = tpu.matmul %58, %63, %cst_39 {dimension_numbers = #tpu.dot_dimension_numbers<[1], [0], [0], [1], [0, 0, 1, 1], [], []>} : vector<16x32xf32>, vector<32x256xf32>, vector<16x256xf32> -> vector<16x256xf32>
    %65 = vector.broadcast %60 : vector<16x1xf32> to vector<16x256xf32>
    %66 = arith.addf %64, %65 : vector<16x256xf32>
    %cst_40 = arith.constant 0.000000e+00 : f32
    %67 = vector.broadcast %cst_40 : f32 to vector<16x256xf32>
    %68 = arith.maximumf %66, %67 : vector<16x256xf32>
    %69 = arith.mulf %68, %0 : vector<16x256xf32>
    %c4_i32_41 = arith.constant 4 : i32
    %70 = tpu.dynamic_rotate %69 by %c4_i32_41 dim 1 : vector<16x256xf32>, i32 -> vector<16x256xf32>
    %71 = tpu.concatenate %70, %69 in 0 : vector<16x256xf32>, vector<16x256xf32> -> vector<32x256xf32>
    %cst_42 = arith.constant dense<0.000000e+00> : vector<16x256xf32>
    %72 = tpu.matmul %59, %71, %cst_42 {dimension_numbers = #tpu.dot_dimension_numbers<[1], [0], [0], [1], [0, 0, 1, 1], [], []>} : vector<16x32xf32>, vector<32x256xf32>, vector<16x256xf32> -> vector<16x256xf32>
    %73 = vector.broadcast %61 : vector<16x1xf32> to vector<16x256xf32>
    %74 = arith.addf %72, %73 : vector<16x256xf32>
    %cst_43 = arith.constant 0.000000e+00 : f32
    %75 = vector.broadcast %cst_43 : f32 to vector<16x256xf32>
    %76 = arith.maximumf %74, %75 : vector<16x256xf32>
    %77 = arith.addf %76, %56 : vector<16x256xf32>
    %cst_44 = arith.constant 0.000000e+00 : f32
    %78 = vector.broadcast %cst_44 : f32 to vector<16x256xf32>
    %79 = arith.maximumf %77, %78 : vector<16x256xf32>
    %c160 = arith.constant 160 : index
    %c0_45 = arith.constant 0 : index
    %80 = vector.load %arg4[%c160, %c0_45] : memref<177x16xf32, #tpu.memory_space<vmem>>, vector<16x1xf32>
    %c176 = arith.constant 176 : index
    %c0_46 = arith.constant 0 : index
    %81 = vector.load %arg4[%c176, %c0_46] : memref<177x16xf32, #tpu.memory_space<vmem>>, vector<1x1xf32>
    %82 = vector.extract_strided_slice %79 {offsets = [0, 127], sizes = [16, 1], strides = [1, 1]} : vector<16x256xf32> to vector<16x1xf32>
    %83 = arith.mulf %80, %82 : vector<16x1xf32>
    %cst_47 = arith.constant dense<0.000000e+00> : vector<1xf32>
    %84 = vector.multi_reduction <add>, %83, %cst_47 [0] : vector<16x1xf32> to vector<1xf32>
    %85 = vector.shape_cast %84 : vector<1xf32> to vector<1x1xf32>
    %86 = arith.addf %85, %81 : vector<1x1xf32>
    %87 = vector.extract_strided_slice %79 {offsets = [0, 255], sizes = [16, 1], strides = [1, 1]} : vector<16x256xf32> to vector<16x1xf32>
    %88 = arith.mulf %80, %87 : vector<16x1xf32>
    %cst_48 = arith.constant dense<0.000000e+00> : vector<1xf32>
    %89 = vector.multi_reduction <add>, %88, %cst_48 [0] : vector<16x1xf32> to vector<1xf32>
    %90 = vector.shape_cast %89 : vector<1xf32> to vector<1x1xf32>
    %91 = arith.addf %90, %81 : vector<1x1xf32>
    %92 = tpu.concatenate %86, %91 in 0 : vector<1x1xf32>, vector<1x1xf32> -> vector<2x1xf32>
    %c0_49 = arith.constant 0 : index
    %c0_50 = arith.constant 0 : index
    %c0_51 = arith.constant 0 : index
    %93 = vector.load %arg5[%c0_49, %c0_50, %c0_51] : memref<1x2x1xf32, #tpu.memory_space<vmem>>, vector<1x2x1xf32>
    %94 = vector.shape_cast %93 : vector<1x2x1xf32> to vector<2x1xf32>
    %95 = vector.shape_cast %92 : vector<2x1xf32> to vector<1x2x1xf32>
    tpu.vector_store %arg5[%c0_49, %c0_50, %c0_51], %95 {strides = array<i32>} : memref<1x2x1xf32, #tpu.memory_space<vmem>>, vector<1x2x1xf32>,
    return
  }
  func.func @transform_0(%arg0: i32) -> (i32, i32) {
    %c0_i32 = arith.constant 0 : i32
    %c0_i32_0 = arith.constant 0 : i32
    return %c0_i32, %arg0 : i32, i32
  }
  func.func @transform_1(%arg0: i32) -> (i32, i32) {
    %c0_i32 = arith.constant 0 : i32
    %c0_i32_0 = arith.constant 0 : i32
    %c0_i32_1 = arith.constant 0 : i32
    return %c0_i32, %c0_i32_0 : i32, i32
  }
  func.func @transform_2(%arg0: i32) -> (i32, i32) {
    %c0_i32 = arith.constant 0 : i32
    %c0_i32_0 = arith.constant 0 : i32
    %c0_i32_1 = arith.constant 0 : i32
    return %c0_i32, %c0_i32_0 : i32, i32
  }
  func.func @transform_3(%arg0: i32) -> (i32, i32) {
    %c0_i32 = arith.constant 0 : i32
    %c0_i32_0 = arith.constant 0 : i32
    %c0_i32_1 = arith.constant 0 : i32
    return %c0_i32, %c0_i32_0 : i32, i32
  }
  func.func @transform_4(%arg0: i32) -> (i32, i32, i32) {
    %c0_i32 = arith.constant 0 : i32
    %c0_i32_0 = arith.constant 0 : i32
    %c0_i32_1 = arith.constant 0 : i32
    return %arg0, %c0_i32, %c0_i32_0 : i32, i32, i32
  }
}

</mosaic_0001>

<bundles_post_ra>
// kernel: tpu_custom_call.1
= control target key start
LH: loop header
LB: loop body
LE: loop exit
PB: predicated region body
PF: predicated region fallthrough
CT: control target
= control target key end

     0   :  { %s1142_s23 = smov 1   ;;  %v1143_v8 = vmov 0.0   ;;  %v1144_v9 = vmov 0   ;;  %v41_v12 = vlaneseq  ;;  %vm58_vm1 = vcmask 261120   ;;  %s1145_s28 = smov 2   ;;  %s1461_s0 = inlined_call_operand.vmem [shape: f32[16,256], index: 0, kind: input, shape index: {}]   ;;  %s1462_s3 = inlined_call_operand.vmem [shape: f32[177,16], index: 3, kind: input, shape index: {}]   ;;  %s1463_s2 = inlined_call_operand.vmem [shape: f32[96,32], index: 2, kind: input, shape index: {}]   ;;  %s1464_s1 = inlined_call_operand.vmem [shape: f32[16,256], index: 1, kind: input, shape index: {}]   ;;  %s1465_s4 = inlined_call_operand.vmem [shape: f32[1,2,1], index: 4, kind: output, shape index: {}]  }
   0x1   :  { %v21_v0 = vld [vmem:[%s1461_s0] sm:$0xff]  ;;  %v23_v1 = vld [vmem:[%s1461_s0 + $0x10] sm:$0xff]  ;;  %v22_v2 = vld [vmem:[%s1461_s0 + $0x8] sm:$0xff]  ;;  %129 = vmatprep.mubr.f32.mxu0 %v1143_v8  ;;  %242 = vmatprep.mubr.f32.mxu1 %v1143_v8  ;;  %vm273_vm2 = vcmask 130048   ;;  %s1146_s26 = smov 4   ;;  %vm961_vm5 = vcmask 7168  }
   0x2   :  { %v1080_v3 = vpack.i.bf16 %v23_v1, %v21_v0  ;;  %v1025_v4 = vpack.c.bf16 %v23_v1, %v21_v0  ;;  %v24_v5 = vld [vmem:[%s1461_s0 + $0x18] sm:$0xff]  ;;  %1090 = vset.pattern.permute.xlu1 %v1144_v9  ;;  %v29_v10 = vld [vmem:[%s1462_s3] sm:$0xff]  ;;  %1101 = vset.pattern.permute.xlu0 %v1144_v9  ;;  %v30_v11 = vld [vmem:[%s1462_s3 + $0x8] sm:$0xff]  ;;  %v1194_v14 = vand.u32 127, %v41_v12  ;;  %vm995_vm6 = vcmask 1040384  }
   0x3   :  { %v1023_v6 = vpack.c.bf16 %v24_v5, %v22_v2  ;;  %v1085_v7 = vpack.i.bf16 %v24_v5, %v22_v2  ;;  %50 = vperm.xlu1 %1090, %v29_v10   ;;  %v25_v26 = vld [vmem:[%s1463_s2] sm:$0xff]  ;;  %v26_v27 = vld [vmem:[%s1463_s2 + $0x8] sm:$0xff]  ;;  %v1228_v41 = vld [vmem:[%s1464_s1 + $0x10] sm:$0xff]  ;;  %vm997_vm7 = vcmask 1024  }
   0x4   :  { %1081 = vrot.lane.b32.xlu0 %v1080_v3, %s1142_s23  ;;  %vm43_vm0 = vcmp.lt.s32.totalorder %v1194_v14, 1  ;;  %v259_v28 = vld [vmem:[%s1462_s3 + $0x20] sm:$0xff]  ;;  %v1233_v43 = vld [vmem:[%s1464_s1 + $0x8] sm:$0xff]  ;;  %v1238_v45 = vld [vmem:[%s1464_s1 + $0x18] sm:$0xff]  ;;  %vm385_vm3 = vcmp.lt.s32.totalorder %v1194_v14, 2  ;;  %vm725_vm4 = vcmp.lt.s32.totalorder %v1194_v14, 4 }
   0x5   :  { %v1223_v39 = vld [vmem:[%s1464_s1] sm:$0xff]  ;;  %v260_v55 = vld [vmem:[%s1462_s3 + $0x28] sm:$0xff]  ;;  %v32_v56 = vld [vmem:[%s1462_s3 + $0x18] sm:$0xff] }
   0x6   :  { %v261_v58 = vld [vmem:[%s1462_s3 + $0x30] sm:$0xff]  ;;  %v262_v61 = vld [vmem:[%s1462_s3 + $0x38] sm:$0xff] }
   0x7   :  { %55 = vperm.xlu1 %1090, %v30_v11   ;;  %v31_v60 = vld [vmem:[%s1462_s3 + $0x10] sm:$0xff]  ;;  %v28_v12 = vld [vmem:[%s1463_s2 + $0x18] sm:$0xff] }
   0x8   :  { %1086 = vrot.lane.b32.xlu0 %v1085_v7, %s1142_s23  ;;  %v27_v11 = vld [vmem:[%s1463_s2 + $0x10] sm:$0xff] }
  0x76   :  { %v1082_v13 = vpop.permute.xlu0 %1081 }
  0x77   :  { %v1084_v16 = vunpack.i.h.bf16 %v1082_v13  ;;  %v1083_v17 = vunpack.i.l.bf16 %v1082_v13 }
  0x7a   :  { %v1087_v15 = vpop.permute.xlu0 %1086 }
  0x7b   :  { %v1089_v18 = vunpack.i.h.bf16 %v1087_v15  ;;  %v1088_v19 = vunpack.i.l.bf16 %v1087_v15 }
  0x7d   :  { %v44_v20 = vsel %vm43_vm0, %v1083_v17, %v1088_v19  ;;  %v45_v21 = vsel %vm43_vm0, %v1084_v16, %v1089_v18  ;;  %v46_v22 = vsel %vm43_vm0, %v1088_v19, %v1083_v17  ;;  %v47_v23 = vsel %vm43_vm0, %v1089_v18, %v1084_v16 }
  0x7e   :  { %v1019_v24 = vpack.c.bf16 %v45_v21, %v44_v20  ;;  %v1021_v25 = vpack.c.bf16 %v47_v23, %v46_v22 }
  0x80   :  { %1020 = vmatprep.subr.bf16.mxu0 %v1019_v24 }
  0x81   :  { %1022 = vmatpush1.bf16.msra.mxu0 %v1021_v25 }
  0x82   :  { %1024 = vmatprep.subr.bf16.mxu0 %v1023_v6  ;;  %v51_v29 = vpop.permute.xlu1 %50 }
  0x85   :  { %1026 = vmatpush1.bf16.msra.mxu0 %v1025_v4 }
  0x86   :  { %1036 = vmatprep.subr.bf16.mxu0 %v1023_v6  ;;  %v56_v34 = vpop.permute.xlu1 %55 }
  0x88   :  { %1003 = vmatmul.mubr.msk.f32.vlgmr.msra.gmra.mrb[0].mxu0 %vm58_vm1, %v25_v26 }
  0x89   :  { %135 = vmatprep.mubr.f32.mxu0 %v1143_v8  ;;  %1038 = vmatpush1.bf16.msra.mxu0 %v1025_v4 }
  0x8c   :  { %1004 = vmatmul.mubr.msk.f32.gmra.mrb[2].mxu0 %vm58_vm1, %v26_v27 }
  0x8d   :  { %344 = vmatprep.mubr.f32.mxu0 %v1143_v8 }
  0x90   :  { %1007 = vmatmul.mubr.msk.f32.vlgmr.msra.gmra.mrb[4].mxu0 %vm273_vm2, %v259_v28 }
  0x91   :  { %350 = vmatprep.mubr.f32.mxu0 %v1143_v8 }
  0x94   :  { %1008 = vmatmul.mubr.msk.f32.gmra.mrb[6].mxu0 %vm273_vm2, %v260_v55 }
  0x95   :  { %583 = vmatprep.mubr.f32.mxu0 %v1143_v8 }
 0x15b   :  { %v131_v30 = vpop.f32.mrb[0].mxu0 }
 0x15c   :  { %v132_v31 = vadd.f32 %v131_v30, %v51_v29  ;;  %v133_v32 = vpop.f32.mrb[1].mxu0 }
 0x15d   :  { %v134_v33 = vadd.f32 %v133_v32, %v51_v29 }
 0x15e   :  { %v142_v36 = vmax.f32 %v132_v31, 0.0 }
 0x15f   :  { %v137_v35 = vpop.f32.mrb[2].mxu0  ;;  %v143_v40 = vmax.f32 %v134_v33, 0.0 }
 0x160   :  { %v138_v37 = vadd.f32 %v137_v35, %v56_v34  ;;  %v139_v38 = vpop.f32.mrb[3].mxu0  ;;  %v146_v47 = vmul.f32 %v142_v36, %v1223_v39 }
 0x161   :  { %v140_v42 = vadd.f32 %v139_v38, %v56_v34  ;;  %v147_v49 = vmul.f32 %v143_v40, %v1233_v43 }
 0x162   :  { %v144_v44 = vmax.f32 %v138_v37, 0.0 }
 0x163   :  { %v145_v46 = vmax.f32 %v140_v42, 0.0  ;;  %v346_v57 = vpop.f32.mrb[4].mxu0 }
 0x164   :  { %v148_v48 = vmul.f32 %v144_v44, %v1228_v41  ;;  %v348_v59 = vpop.f32.mrb[5].mxu0 }
 0x165   :  { %v149_v50 = vmul.f32 %v145_v46, %v1238_v45 }
 0x166   :  { %v1091_v51 = vpack.i.bf16 %v148_v48, %v146_v47  ;;  %v1033_v52 = vpack.c.bf16 %v148_v48, %v146_v47 }
 0x167   :  { %v1096_v53 = vpack.i.bf16 %v149_v50, %v147_v49  ;;  %v1031_v54 = vpack.c.bf16 %v149_v50, %v147_v49  ;;  %v352_v13 = vpop.f32.mrb[6].mxu0 }
 0x168   :  { %1092 = vrot.lane.b32.xlu0 %v1091_v51, %s1142_s23  ;;  %v354_v15 = vpop.f32.mrb[7].mxu0 }
 0x169   :  { %1097 = vrot.lane.b32.xlu1 %v1096_v53, %s1142_s23 }
 0x16c   :  { %164 = vperm.xlu0 %1101, %v31_v60  }
 0x16d   :  { %169 = vperm.xlu1 %1090, %v32_v56  }
 0x170   :  { %270 = vperm.xlu0 %1101, %v262_v61  }
 0x171   :  { %265 = vperm.xlu1 %1090, %v261_v58   ;;  %v373_v58 = vld [vmem:[%s1462_s3 + $0x40] sm:$0xff] }
 0x1da   :  { %v1093_v62 = vpop.permute.xlu0 %1092 }
 0x1db   :  { %v1095_v63 = vunpack.i.h.bf16 %v1093_v62  ;;  %v1094_v0 = vunpack.i.l.bf16 %v1093_v62  ;;  %v1098_v1 = vpop.permute.xlu1 %1097 }
 0x1dc   :  { %v1100_v2 = vunpack.i.h.bf16 %v1098_v1  ;;  %v1099_v3 = vunpack.i.l.bf16 %v1098_v1 }
 0x1de   :  { %v158_v4 = vsel %vm43_vm0, %v1094_v0, %v1099_v3  ;;  %v159_v5 = vsel %vm43_vm0, %v1095_v63, %v1100_v2  ;;  %v160_v6 = vsel %vm43_vm0, %v1099_v3, %v1094_v0  ;;  %v161_v7 = vsel %vm43_vm0, %v1100_v2, %v1095_v63 }
 0x1df   :  { %v1027_v9 = vpack.c.bf16 %v159_v5, %v158_v4  ;;  %v1029_v10 = vpack.c.bf16 %v161_v7, %v160_v6 }
 0x1e1   :  { %1028 = vmatprep.subr.bf16.mxu1 %v1027_v9  ;;  %v369_v9 = vld [vmem:[%s1463_s2 + $0x20] sm:$0xff] }
 0x1e2   :  { %1030 = vmatpush1.bf16.msra.mxu1 %v1029_v10  ;;  %v370_v10 = vld [vmem:[%s1463_s2 + $0x28] sm:$0xff] }
 0x1e3   :  { %1032 = vmatprep.subr.bf16.mxu1 %v1031_v54 }
 0x1e6   :  { %1034 = vmatpush1.bf16.msra.mxu1 %v1033_v52 }
 0x1e9   :  { %1005 = vmatmul.mubr.msk.f32.vlgmr.msra.gmra.mrb[0].mxu1 %vm58_vm1, %v27_v11  ;;  %v600_v11 = vld [vmem:[%s1462_s3 + $0x60] sm:$0xff] }
 0x1ea   :  { %248 = vmatprep.mubr.f32.mxu1 %v1143_v8 }
 0x1eb   :  { %v165_v17 = vpop.permute.xlu0 %164 }
 0x1ec   :  { %v170_v16 = vpop.permute.xlu1 %169 }
 0x1ed   :  { %1006 = vmatmul.mubr.msk.f32.gmra.mrb[2].mxu1 %vm58_vm1, %v28_v12  ;;  %v601_v12 = vld [vmem:[%s1462_s3 + $0x68] sm:$0xff] }
 0x1ee   :  { %470 = vmatprep.mubr.f32.mxu1 %v1143_v8 }
 0x1ef   :  { %v271_v27 = vpop.permute.xlu0 %270 }
 0x1f0   :  { %v266_v18 = vpop.permute.xlu1 %265  ;;  %v353_v34 = vadd.f32 %v352_v13, %v271_v27  ;;  %v355_v36 = vadd.f32 %v354_v15, %v271_v27 }
 0x1f1   :  { %v347_v23 = vadd.f32 %v346_v57, %v266_v18  ;;  %v349_v25 = vadd.f32 %v348_v59, %v266_v18  ;;  %v374_v59 = vld [vmem:[%s1462_s3 + $0x48] sm:$0xff] }
 0x2bc   :  { %v244_v19 = vpop.f32.mrb[0].mxu1 }
 0x2bd   :  { %v245_v20 = vadd.f32 %v244_v19, %v165_v17  ;;  %v246_v21 = vpop.f32.mrb[1].mxu1 }
 0x2be   :  { %v247_v22 = vadd.f32 %v246_v21, %v165_v17 }
 0x2bf   :  { %v255_v24 = vmax.f32 %v245_v20, 0.0 }
 0x2c0   :  { %v256_v26 = vmax.f32 %v247_v22, 0.0  ;;  %v250_v28 = vpop.f32.mrb[2].mxu1 }
 0x2c1   :  { %v357_v29 = vadd.f32 %v347_v23, %v255_v24  ;;  %v251_v30 = vadd.f32 %v250_v28, %v170_v16  ;;  %v252_v31 = vpop.f32.mrb[3].mxu1 }
 0x2c2   :  { %v358_v32 = vadd.f32 %v349_v25, %v256_v26  ;;  %v253_v33 = vadd.f32 %v252_v31, %v170_v16 }
 0x2c3   :  { %v257_v35 = vmax.f32 %v251_v30, 0.0  ;;  %v361_v38 = vmax.f32 %v357_v29, 0.0 }
 0x2c4   :  { %v258_v37 = vmax.f32 %v253_v33, 0.0  ;;  %v362_v42 = vmax.f32 %v358_v32, 0.0 }
 0x2c5   :  { %v359_v40 = vadd.f32 %v353_v34, %v257_v35  ;;  %v365_v48 = vmul.f32 %v361_v38, %v1223_v39 }
 0x2c6   :  { %v360_v44 = vadd.f32 %v355_v36, %v258_v37  ;;  %v366_v51 = vmul.f32 %v362_v42, %v1233_v43  ;;  %v375_v36 = vld [vmem:[%s1462_s3 + $0x50] sm:$0xff]  ;;  %v376_v37 = vld [vmem:[%s1462_s3 + $0x58] sm:$0xff] }
 0x2c7   :  { %v363_v46 = vmax.f32 %v359_v40, 0.0 }
 0x2c8   :  { %v364_v47 = vmax.f32 %v360_v44, 0.0 }
 0x2c9   :  { %v367_v49 = vmul.f32 %v363_v46, %v1228_v41  ;;  %v1057_v50 = vpack.c.bf16 %v363_v46, %v361_v38  ;;  %v602_v38 = vld [vmem:[%s1462_s3 + $0x70] sm:$0xff] }
 0x2ca   :  { %v368_v52 = vmul.f32 %v364_v47, %v1238_v45  ;;  %v1055_v53 = vpack.c.bf16 %v364_v47, %v362_v42  ;;  %v603_v42 = vld [vmem:[%s1462_s3 + $0x78] sm:$0xff] }
 0x2cb   :  { %v1102_v54 = vpack.i.bf16 %v367_v49, %v365_v48  ;;  %v1045_v55 = vpack.c.bf16 %v367_v49, %v365_v48 }
 0x2cc   :  { %v1107_v56 = vpack.i.bf16 %v368_v52, %v366_v51  ;;  %v1043_v57 = vpack.c.bf16 %v368_v52, %v366_v51 }
 0x2cd   :  { %1103 = vrot.lane.b32.xlu1 %v1102_v54, %s1145_s28 }
 0x2ce   :  { %1108 = vrot.lane.b32.xlu0 %v1107_v56, %s1145_s28 }
 0x2d1   :  { %392 = vperm.xlu1 %1090, %v373_v58  }
 0x2d2   :  { %397 = vperm.xlu0 %1101, %v374_v59  }
 0x33f   :  { %v1104_v60 = vpop.permute.xlu1 %1103 }
 0x340   :  { %v1106_v61 = vunpack.i.h.bf16 %v1104_v60  ;;  %v1105_v62 = vunpack.i.l.bf16 %v1104_v60  ;;  %v1109_v63 = vpop.permute.xlu0 %1108  ;;  %v371_v60 = vld [vmem:[%s1463_s2 + $0x30] sm:$0xff] }
 0x341   :  { %v1111_v0 = vunpack.i.h.bf16 %v1109_v63  ;;  %v1110_v1 = vunpack.i.l.bf16 %v1109_v63 }
 0x343   :  { %v388_v2 = vsel %vm385_vm3, %v1110_v1, %v1105_v62  ;;  %v389_v3 = vsel %vm385_vm3, %v1111_v0, %v1106_v61  ;;  %v386_v4 = vsel %vm385_vm3, %v1105_v62, %v1110_v1  ;;  %v387_v5 = vsel %vm385_vm3, %v1106_v61, %v1111_v0  ;;  %v372_v61 = vld [vmem:[%s1463_s2 + $0x38] sm:$0xff] }
 0x344   :  { %v1041_v6 = vpack.c.bf16 %v389_v3, %v388_v2  ;;  %v1039_v7 = vpack.c.bf16 %v387_v5, %v386_v4 }
 0x346   :  { %1040 = vmatprep.subr.bf16.mxu1 %v1039_v7 }
 0x347   :  { %1042 = vmatpush1.bf16.msra.mxu1 %v1041_v6 }
 0x348   :  { %1044 = vmatprep.subr.bf16.mxu1 %v1043_v57 }
 0x34b   :  { %1046 = vmatpush1.bf16.msra.mxu1 %v1045_v55 }
 0x34c   :  { %1056 = vmatprep.subr.bf16.mxu1 %v1055_v53 }
 0x34e   :  { %1009 = vmatmul.mubr.msk.f32.vlgmr.msra.gmra.mrb[4].mxu1 %vm58_vm1, %v369_v9 }
 0x34f   :  { %1058 = vmatpush1.bf16.msra.mxu1 %v1057_v50  ;;  %476 = vmatprep.mubr.f32.mxu1 %v1143_v8 }
 0x350   :  { %v393_v13 = vpop.permute.xlu1 %392 }
 0x351   :  { %v398_v19 = vpop.permute.xlu0 %397 }
 0x352   :  { %1010 = vmatmul.mubr.msk.f32.gmra.mrb[6].mxu1 %vm58_vm1, %v370_v10 }
 0x353   :  { %684 = vmatprep.mubr.f32.mxu1 %v1143_v8 }
 0x356   :  { %1013 = vmatmul.mubr.msk.f32.vlgmr.msra.gmra.mrb[8].mxu1 %vm273_vm2, %v600_v11 }
 0x357   :  { %690 = vmatprep.mubr.f32.mxu1 %v1143_v8 }
 0x35a   :  { %1014 = vmatmul.mubr.msk.f32.gmra.mrb[10].mxu1 %vm273_vm2, %v601_v12 }
 0x35b   :  { %923 = vmatprep.mubr.f32.mxu1 %v1143_v8 }
 0x421   :  { %v472_v15 = vpop.f32.mrb[4].mxu1 }
 0x422   :  { %v473_v16 = vadd.f32 %v472_v15, %v393_v13  ;;  %v474_v17 = vpop.f32.mrb[5].mxu1 }
 0x423   :  { %v475_v18 = vadd.f32 %v474_v17, %v393_v13 }
 0x424   :  { %v483_v21 = vmax.f32 %v473_v16, 0.0 }
 0x425   :  { %v478_v20 = vpop.f32.mrb[6].mxu1  ;;  %v484_v24 = vmax.f32 %v475_v18, 0.0 }
 0x426   :  { %v479_v22 = vadd.f32 %v478_v20, %v398_v19  ;;  %v480_v23 = vpop.f32.mrb[7].mxu1  ;;  %v487_v28 = vmul.f32 %v483_v21, %v1223_v39 }
 0x427   :  { %v481_v25 = vadd.f32 %v480_v23, %v398_v19  ;;  %v488_v30 = vmul.f32 %v484_v24, %v1233_v43 }
 0x428   :  { %v485_v26 = vmax.f32 %v479_v22, 0.0 }
 0x429   :  { %v486_v27 = vmax.f32 %v481_v25, 0.0  ;;  %v686_v40 = vpop.f32.mrb[8].mxu1 }
 0x42a   :  { %v489_v29 = vmul.f32 %v485_v26, %v1228_v41  ;;  %v688_v44 = vpop.f32.mrb[9].mxu1 }
 0x42b   :  { %v490_v31 = vmul.f32 %v486_v27, %v1238_v45 }
 0x42c   :  { %v1053_v32 = vpack.c.bf16 %v489_v29, %v487_v28  ;;  %v1112_v33 = vpack.i.bf16 %v489_v29, %v487_v28 }
 0x42d   :  { %v1117_v34 = vpack.i.bf16 %v490_v31, %v488_v30  ;;  %v1051_v35 = vpack.c.bf16 %v490_v31, %v488_v30  ;;  %v692_v46 = vpop.f32.mrb[10].mxu1 }
 0x42e   :  { %1113 = vrot.lane.b32.xlu1 %v1112_v33, %s1145_s28  ;;  %v694_v47 = vpop.f32.mrb[11].mxu1 }
 0x42f   :  { %1118 = vrot.lane.b32.xlu0 %v1117_v34, %s1145_s28 }
 0x432   :  { %505 = vperm.xlu1 %1090, %v375_v36   ;;  %v713_v36 = vld [vmem:[%s1462_s3 + $0x80] sm:$0xff] }
 0x433   :  { %510 = vperm.xlu0 %1101, %v376_v37   ;;  %v714_v37 = vld [vmem:[%s1462_s3 + $0x88] sm:$0xff] }
 0x436   :  { %606 = vperm.xlu1 %1090, %v602_v38  }
 0x437   :  { %611 = vperm.xlu0 %1101, %v603_v42  }
 0x4a0   :  { %v1114_v48 = vpop.permute.xlu1 %1113 }
 0x4a1   :  { %v1116_v49 = vunpack.i.h.bf16 %v1114_v48  ;;  %v1115_v50 = vunpack.i.l.bf16 %v1114_v48  ;;  %v1119_v51 = vpop.permute.xlu0 %1118 }
 0x4a2   :  { %v1121_v52 = vunpack.i.h.bf16 %v1119_v51  ;;  %v1120_v53 = vunpack.i.l.bf16 %v1119_v51 }
 0x4a4   :  { %v501_v54 = vsel %vm385_vm3, %v1120_v53, %v1115_v50  ;;  %v502_v55 = vsel %vm385_vm3, %v1121_v52, %v1116_v49  ;;  %v499_v56 = vsel %vm385_vm3, %v1115_v50, %v1120_v53  ;;  %v500_v57 = vsel %vm385_vm3, %v1116_v49, %v1121_v52 }
 0x4a5   :  { %v1049_v58 = vpack.c.bf16 %v502_v55, %v501_v54  ;;  %v1047_v59 = vpack.c.bf16 %v500_v57, %v499_v56  ;;  %v709_v54 = vld [vmem:[%s1463_s2 + $0x40] sm:$0xff]  ;;  %v710_v55 = vld [vmem:[%s1463_s2 + $0x48] sm:$0xff] }
 0x4a7   :  { %1048 = vmatprep.subr.bf16.mxu0 %v1047_v59 }
 0x4a8   :  { %1050 = vmatpush1.bf16.msra.mxu0 %v1049_v58 }
 0x4a9   :  { %1052 = vmatprep.subr.bf16.mxu0 %v1051_v35 }
 0x4ac   :  { %1054 = vmatpush1.bf16.msra.mxu0 %v1053_v32 }
 0x4af   :  { %1011 = vmatmul.mubr.msk.f32.vlgmr.msra.gmra.mrb[8].mxu0 %vm58_vm1, %v371_v60 }
 0x4b0   :  { %589 = vmatprep.mubr.f32.mxu0 %v1143_v8 }
 0x4b1   :  { %v506_v62 = vpop.permute.xlu1 %505 }
 0x4b2   :  { %v511_v63 = vpop.permute.xlu0 %510 }
 0x4b3   :  { %1012 = vmatmul.mubr.msk.f32.gmra.mrb[10].mxu0 %vm58_vm1, %v372_v61 }
 0x4b4   :  { %810 = vmatprep.mubr.f32.mxu0 %v1143_v8 }
 0x4b5   :  { %v607_v0 = vpop.permute.xlu1 %606 }
 0x4b6   :  { %v687_v5 = vadd.f32 %v686_v40, %v607_v0  ;;  %v689_v7 = vadd.f32 %v688_v44, %v607_v0  ;;  %v612_v9 = vpop.permute.xlu0 %611 }
 0x4b7   :  { %v693_v18 = vadd.f32 %v692_v46, %v612_v9  ;;  %v695_v20 = vadd.f32 %v694_v47, %v612_v9 }
 0x582   :  { %v585_v1 = vpop.f32.mrb[8].mxu0 }
 0x583   :  { %v586_v2 = vadd.f32 %v585_v1, %v506_v62  ;;  %v587_v3 = vpop.f32.mrb[9].mxu0 }
 0x584   :  { %v588_v4 = vadd.f32 %v587_v3, %v506_v62 }
 0x585   :  { %v596_v6 = vmax.f32 %v586_v2, 0.0 }
 0x586   :  { %v597_v10 = vmax.f32 %v588_v4, 0.0  ;;  %v591_v11 = vpop.f32.mrb[10].mxu0 }
 0x587   :  { %v1358_v12 = vadd.f32 %v687_v5, %v596_v6  ;;  %v592_v13 = vadd.f32 %v591_v11, %v511_v63  ;;  %v593_v15 = vpop.f32.mrb[11].mxu0 }
 0x588   :  { %v1360_v16 = vadd.f32 %v689_v7, %v597_v10  ;;  %v594_v17 = vadd.f32 %v593_v15, %v511_v63 }
 0x589   :  { %v598_v19 = vmax.f32 %v592_v13, 0.0  ;;  %v701_v22 = vmax.f32 %v1358_v12, 0.0  ;;  %v948_v12 = vld [vmem:[%s1462_s3 + $0xa0] sm:$0xff] }
 0x58a   :  { %v599_v21 = vmax.f32 %v594_v17, 0.0  ;;  %v702_v24 = vmax.f32 %v1360_v16, 0.0 }
 0x58b   :  { %v1363_v23 = vadd.f32 %v693_v18, %v598_v19  ;;  %v705_v28 = vmul.f32 %v701_v22, %v1223_v39  ;;  %v715_v18 = vld [vmem:[%s1462_s3 + $0x90] sm:$0xff] }
 0x58c   :  { %v1366_v25 = vadd.f32 %v695_v20, %v599_v21  ;;  %v706_v30 = vmul.f32 %v702_v24, %v1233_v43 }
 0x58d   :  { %v703_v26 = vmax.f32 %v1363_v23, 0.0 }
 0x58e   :  { %v704_v27 = vmax.f32 %v1366_v25, 0.0 }
 0x58f   :  { %v707_v29 = vmul.f32 %v703_v26, %v1228_v41 }
 0x590   :  { %v708_v31 = vmul.f32 %v704_v27, %v1238_v45 }
 0x591   :  { %v1122_v32 = vpack.i.bf16 %v707_v29, %v705_v28  ;;  %v1065_v33 = vpack.c.bf16 %v707_v29, %v705_v28 }
 0x592   :  { %v1127_v34 = vpack.i.bf16 %v708_v31, %v706_v30  ;;  %v1063_v35 = vpack.c.bf16 %v708_v31, %v706_v30 }
 0x593   :  { %1123 = vrot.lane.b32.xlu1 %v1122_v32, %s1146_s26 }
 0x594   :  { %1128 = vrot.lane.b32.xlu0 %v1127_v34, %s1146_s26  ;;  %v711_v34 = vld [vmem:[%s1463_s2 + $0x50] sm:$0xff] }
 0x597   :  { %732 = vperm.xlu1 %1090, %v713_v36  }
 0x598   :  { %737 = vperm.xlu0 %1101, %v714_v37  }
 0x605   :  { %v1124_v38 = vpop.permute.xlu1 %1123 }
 0x606   :  { %v1126_v40 = vunpack.i.h.bf16 %v1124_v38  ;;  %v1125_v42 = vunpack.i.l.bf16 %v1124_v38  ;;  %v1129_v44 = vpop.permute.xlu0 %1128 }
 0x607   :  { %v1131_v46 = vunpack.i.h.bf16 %v1129_v44  ;;  %v1130_v47 = vunpack.i.l.bf16 %v1129_v44 }
 0x609   :  { %v728_v48 = vsel %vm725_vm4, %v1130_v47, %v1125_v42  ;;  %v729_v49 = vsel %vm725_vm4, %v1131_v46, %v1126_v40  ;;  %v726_v50 = vsel %vm725_vm4, %v1125_v42, %v1130_v47  ;;  %v727_v51 = vsel %vm725_vm4, %v1126_v40, %v1131_v46 }
 0x60a   :  { %v1061_v52 = vpack.c.bf16 %v729_v49, %v728_v48  ;;  %v1059_v53 = vpack.c.bf16 %v727_v51, %v726_v50 }
 0x60c   :  { %1060 = vmatprep.subr.bf16.mxu0 %v1059_v53 }
 0x60d   :  { %1062 = vmatpush1.bf16.msra.mxu0 %v1061_v52 }
 0x60e   :  { %1064 = vmatprep.subr.bf16.mxu0 %v1063_v35  ;;  %v712_v35 = vld [vmem:[%s1463_s2 + $0x58] sm:$0xff] }
 0x611   :  { %1066 = vmatpush1.bf16.msra.mxu0 %v1065_v33 }
 0x614   :  { %1015 = vmatmul.mubr.msk.f32.vlgmr.msra.gmra.mrb[12].mxu0 %vm58_vm1, %v709_v54 }
 0x615   :  { %816 = vmatprep.mubr.f32.mxu0 %v1143_v8 }
 0x616   :  { %v733_v56 = vpop.permute.xlu1 %732 }
 0x617   :  { %v738_v61 = vpop.permute.xlu0 %737 }
 0x618   :  { %1016 = vmatmul.mubr.msk.f32.gmra.mrb[14].mxu0 %vm58_vm1, %v710_v55 }
 0x6e7   :  { %v812_v57 = vpop.f32.mrb[12].mxu0 }
 0x6e8   :  { %v813_v58 = vadd.f32 %v812_v57, %v733_v56  ;;  %v814_v59 = vpop.f32.mrb[13].mxu0 }
 0x6e9   :  { %v815_v60 = vadd.f32 %v814_v59, %v733_v56 }
 0x6ea   :  { %v823_v63 = vmax.f32 %v813_v58, 0.0 }
 0x6eb   :  { %v818_v62 = vpop.f32.mrb[14].mxu0  ;;  %v824_v2 = vmax.f32 %v815_v60, 0.0 }
 0x6ec   :  { %v819_v0 = vadd.f32 %v818_v62, %v738_v61  ;;  %v820_v1 = vpop.f32.mrb[15].mxu0  ;;  %v827_v6 = vmul.f32 %v823_v63, %v1223_v39  ;;  %v716_v39 = vld [vmem:[%s1462_s3 + $0x98] sm:$0xff] }
 0x6ed   :  { %v821_v3 = vadd.f32 %v820_v1, %v738_v61  ;;  %v828_v9 = vmul.f32 %v824_v2, %v1233_v43 }
 0x6ee   :  { %v825_v4 = vmax.f32 %v819_v0, 0.0 }
 0x6ef   :  { %v826_v5 = vmax.f32 %v821_v3, 0.0 }
 0x6f0   :  { %v829_v7 = vmul.f32 %v825_v4, %v1228_v41 }
 0x6f1   :  { %v830_v10 = vmul.f32 %v826_v5, %v1238_v45 }
 0x6f2   :  { %v1073_v11 = vpack.c.bf16 %v829_v7, %v827_v6  ;;  %v1132_v13 = vpack.i.bf16 %v829_v7, %v827_v6 }
 0x6f3   :  { %v1137_v15 = vpack.i.bf16 %v830_v10, %v828_v9  ;;  %v1071_v17 = vpack.c.bf16 %v830_v10, %v828_v9 }
 0x6f4   :  { %1133 = vrot.lane.b32.xlu1 %v1132_v13, %s1146_s26 }
 0x6f5   :  { %1138 = vrot.lane.b32.xlu0 %v1137_v15, %s1146_s26  ;;  %v950_v15 = vld [vmem:[%s1462_s3 + $0xb0] sm:$0x1] }
 0x6f8   :  { %845 = vperm.xlu1 %1090, %v715_v18  }
 0x6f9   :  { %850 = vperm.xlu0 %1101, %v716_v39  }
 0x766   :  { %v1134_v41 = vpop.permute.xlu1 %1133 }
 0x767   :  { %v1136_v43 = vunpack.i.h.bf16 %v1134_v41  ;;  %v1135_v45 = vunpack.i.l.bf16 %v1134_v41  ;;  %v1139_v19 = vpop.permute.xlu0 %1138 }
 0x768   :  { %v1141_v20 = vunpack.i.h.bf16 %v1139_v19  ;;  %v1140_v21 = vunpack.i.l.bf16 %v1139_v19 }
 0x76a   :  { %v841_v28 = vsel %vm725_vm4, %v1140_v21, %v1135_v45  ;;  %v842_v29 = vsel %vm725_vm4, %v1141_v20, %v1136_v43  ;;  %v839_v30 = vsel %vm725_vm4, %v1135_v45, %v1140_v21  ;;  %v840_v31 = vsel %vm725_vm4, %v1136_v43, %v1141_v20 }
 0x76b   :  { %v1069_v32 = vpack.c.bf16 %v842_v29, %v841_v28  ;;  %v1067_v33 = vpack.c.bf16 %v840_v31, %v839_v30 }
 0x76d   :  { %1068 = vmatprep.subr.bf16.mxu1 %v1067_v33 }
 0x76e   :  { %1070 = vmatpush1.bf16.msra.mxu1 %v1069_v32 }
 0x76f   :  { %1072 = vmatprep.subr.bf16.mxu1 %v1071_v17 }
 0x772   :  { %1074 = vmatpush1.bf16.msra.mxu1 %v1073_v11 }
 0x775   :  { %1017 = vmatmul.mubr.msk.f32.vlgmr.msra.gmra.mrb[12].mxu1 %vm58_vm1, %v711_v34 }
 0x776   :  { %929 = vmatprep.mubr.f32.mxu1 %v1143_v8 }
 0x777   :  { %v846_v14 = vpop.permute.xlu1 %845 }
 0x778   :  { %v851_v42 = vpop.permute.xlu0 %850 }
 0x779   :  { %1018 = vmatmul.mubr.msk.f32.gmra.mrb[14].mxu1 %vm58_vm1, %v712_v35 }
 0x848   :  { %v925_v36 = vpop.f32.mrb[12].mxu1 }
 0x849   :  { %v926_v37 = vadd.f32 %v925_v36, %v846_v14  ;;  %v927_v38 = vpop.f32.mrb[13].mxu1 }
 0x84a   :  { %v928_v40 = vadd.f32 %v927_v38, %v846_v14 }
 0x84b   :  { %v936_v44 = vmax.f32 %v926_v37, 0.0 }
 0x84c   :  { %v937_v46 = vmax.f32 %v928_v40, 0.0  ;;  %v931_v47 = vpop.f32.mrb[14].mxu1 }
 0x84d   :  { %v932_v48 = vadd.f32 %v931_v47, %v851_v42  ;;  %v933_v49 = vpop.f32.mrb[15].mxu1  ;;  %v940_v51 = vadd.f32 %v936_v44, %v701_v22 }
 0x84e   :  { %v941_v8 = vadd.f32 %v937_v46, %v702_v24  ;;  %v934_v50 = vadd.f32 %v933_v49, %v851_v42  ;;  %v949_v24 = vld [vmem:[%s1462_s3 + $0xa8] sm:$0xff] }
 0x84f   :  { %v938_v53 = vmax.f32 %v932_v48, 0.0  ;;  %v944_v56 = vmax.f32 %v940_v51, 0.0 }
 0x850   :  { %v945_v52 = vmax.f32 %v941_v8, 0.0  ;;  %v939_v54 = vmax.f32 %v934_v50, 0.0 }
 0x851   :  { %v942_v57 = vadd.f32 %v938_v53, %v703_v26 }
 0x852   :  { %v943_v55 = vadd.f32 %v939_v54, %v704_v27  ;;  %974 = vrot.lane.b32.xlu1 %v945_v52, %s1142_s23 }
 0x853   :  { %v946_v16 = vmax.f32 %v942_v57, 0.0 }
 0x854   :  { %v947_v58 = vmax.f32 %v943_v55, 0.0 }
 0x856   :  { %976 = vrot.lane.b32.xlu0 %v947_v58, %s1142_s23  ;;  %953 = vrot.lane.b32.xlu1 %v944_v56, %s1142_s23 }
 0x85a   :  { %955 = vrot.lane.b32.xlu0 %v946_v16, %s1142_s23 }
 0x8c4   :  { %v975_v22 = vpop.permute.xlu1 %974 }
 0x8c5   :  { %v980_v25 = vmul.f32 %v975_v22, %v948_v12 }
 0x8c7   :  { %v982_v59 = vsel %vm961_vm5, %v980_v25, 0.0 }
 0x8c8   :  { %v977_v23 = vpop.permute.xlu0 %976  ;;  %v954_v26 = vpop.permute.xlu1 %953 }
 0x8c9   :  { %v981_v27 = vmul.f32 %v977_v23, %v949_v24  ;;  %v959_v61 = vmul.f32 %v954_v26, %v948_v12 }
 0x8cb   :  { %v983_v60 = vsel %vm961_vm5, %v981_v27, 0.0  ;;  %v962_v2 = vsel %vm961_vm5, %v959_v61, 0.0 }
 0x8cc   :  { %v984_v62 = vadd.f32 %v983_v60, %v982_v59  ;;  %v956_v63 = vpop.permute.xlu0 %955 }
 0x8cd   :  { %v960_v0 = vmul.f32 %v956_v63, %v949_v24 }
 0x8ce   :  { %v985_v1 = vrot.slane %v984_v62, 4 }
 0x8cf   :  { %v963_v3 = vsel %vm961_vm5, %v960_v0, 0.0 }
 0x8d0   :  { %v986_v4 = vadd.f32 %v985_v1, %v984_v62  ;;  %v964_v5 = vadd.f32 %v963_v3, %v962_v2 }
 0x8d2   :  { %v987_v6 = vrot.slane %v986_v4, 2  ;;  %v965_v7 = vrot.slane %v964_v5, 4 }
 0x8d4   :  { %v988_v9 = vadd.f32 %v987_v6, %v986_v4  ;;  %v966_v10 = vadd.f32 %v965_v7, %v964_v5 }
 0x8d6   :  { %v989_v11 = vrot.slane %v988_v9, 1  ;;  %v967_v13 = vrot.slane %v966_v10, 2 }
 0x8d8   :  { %v990_v17 = vadd.f32 %v989_v11, %v988_v9  ;;  %v968_v18 = vadd.f32 %v967_v13, %v966_v10 }
 0x8da   :  { %v991_v39 = vadd.f32 %v990_v17, %v950_v15  ;;  %v969_v41 = vrot.slane %v968_v18, 1 }
 0x8dc   :  { %v970_v43 = vadd.f32 %v969_v41, %v968_v18  ;;  %v993_v45 = vrot.slane %v991_v39, 7 }
 0x8de   :  { %v971_v19 = vadd.f32 %v970_v43, %v950_v15 }
 0x8e0   :  { %v996_v20 = vsel %vm995_vm6, %v971_v19, %v993_v45 }
 0x8e1   :  { %998 = vst.msk [vmem:[%s1465_s4] sm:$0x3] %vm997_vm7, %v996_v20 }

</bundles_post_ra>
